<compile_context>
chip_gen: v7x
topology: tpu7x:2x2x1
jax: 0.10.0
libtpu: 0.0.40
codegen_flags: <defaults>
</compile_context>

<pallas_src>
import numpy as np
import jax
import jax.numpy as jnp
from jax.experimental import pallas as pl
from jax.experimental.pallas import tpu as pltpu

EPS = 1e-5
LANE = 128


def _bilinear_matrix(in_size, out_size):
    """Interpolation matrix matching PyTorch bilinear, align_corners=False (weights exact in bf16)."""
    i = np.arange(out_size, dtype=np.float64)
    src = (i + 0.5) * (in_size / out_size) - 0.5
    src = np.maximum(src, 0.0)                      # PyTorch clamps negative src to 0
    i0 = np.minimum(np.floor(src).astype(np.int64), in_size - 1)
    i1 = np.minimum(i0 + 1, in_size - 1)
    w1 = src - i0
    w0 = 1.0 - w1
    m = np.zeros((out_size, in_size), dtype=np.float64)
    m[np.arange(out_size), i0] += w0
    m[np.arange(out_size), i1] += w1
    return jnp.asarray(m, dtype=jnp.float32)


# ----------------------------- Pallas kernel ----------------------------------

def _upsample_conv_kernel(x_ref, r_ref, uh_ref, w_ref, y_ref, ssum_ref, ssq_ref):
    """Fused bilinear-upsample + 3x3 conv + BN partial sums for Nb batch elements.

    x_ref  : (1, Nb*H, C_in*W)      bf16 input rows (channels folded next to W in lanes)
    r_ref  : (C_in*W, PW)           bf16 block-diagonal column-interp matrix (zero conv-pad baked in)
    uh_ref : (3*Nb*H2, Nb*H)        bf16 stacked (per row tap dy, block-diagonal per batch) row-interp
    w_ref  : (3, PW, W2*C_out)      bf16 banded conv weights, one slab per row tap
    y_ref  : (1, Nb*H2, W2*C_out)   bf16 lane-dense conv output
    ssum_ref, ssq_ref : (1, 1, W2*C_out) fp32 per-step column sums / sums-of-squares
    """
    rows = y_ref.shape[1]                            # Nb*H2, sublane-aligned
    # column interp first -> lane-dense (Nb*H, PW); fp32 accumulation on the MXU
    xc = jnp.dot(x_ref[0], r_ref[...], preferred_element_type=jnp.float32)
    # stacked row interp: (3*Nb*H2, Nb*H) @ (Nb*H, PW) -> all three row taps at once
    xp = jnp.dot(uh_ref[...], xc.astype(jnp.bfloat16), preferred_element_type=jnp.float32)
    xpb = xp.astype(jnp.bfloat16)

    # 3x3 conv = three accumulated K=PW matmuls (aligned static slices, no taps concat)
    acc = jnp.dot(xpb[0:rows, :], w_ref[0], preferred_element_type=jnp.float32)
    for dy in range(1, 3):                           # unrolled at trace time
        acc = acc + jnp.dot(xpb[dy * rows:(dy + 1) * rows, :], w_ref[dy],
                            preferred_element_type=jnp.float32)

    y_ref[0] = acc.astype(y_ref.dtype)
    ssum_ref[0] = jnp.sum(acc, axis=0, keepdims=True)
    ssq_ref[0] = jnp.sum(acc * acc, axis=0, keepdims=True)


# ------------------------------- wrapper --------------------------------------

def upsample_block_forward(x_nchw, weight, bias, gamma, beta, *, scale=2):
    """Forward pass of UpsampleBlock. x_nchw: (N, C_in, H, W) f32 -> (N, C_out, sH, sW) f32."""
    del bias  # conv bias cancels exactly under training-mode BatchNorm
    # TODO(synk): eval-mode BN / running-stat updates are not implemented (training-mode stats only).
    N, C_in, H, W = x_nchw.shape
    C_out = weight.shape[0]
    H2, W2 = H * scale, W * scale
    nout = W2 * C_out
    pw = -(-(C_in * (W2 + 2)) // LANE) * LANE        # lane-aligned padded "upsampled row" width
    # NOTE(v5e): only C_in*(W2+2) of the PW columns are non-zero; lane alignment is kept because
    # the padded K is effectively free on v6e/v7x MXUs.

    # batch elements per grid step: feed the MXU up to ~256 rows per conv matmul
    nb = 1
    for d in range(1, N + 1):
        if N % d == 0 and d * H2 <= 256:
            nb = d
    steps = N // nb

    # ---- constants (built in fp32, fed as bf16; all interp weights are exact in bf16) -------
    uh_pad = jnp.pad(_bilinear_matrix(H, H2), ((1, 1), (0, 0)))                  # (H2+2, H)
    eye_nb = jnp.eye(nb, dtype=jnp.float32)
    uh_big = jnp.concatenate(
        [jnp.kron(eye_nb, uh_pad[dy:dy + H2, :]) for dy in range(3)], axis=0)    # (3*nb*H2, nb*H)

    uwp_t = jnp.pad(_bilinear_matrix(W, W2), ((1, 1), (0, 0))).T                 # (W, W2+2)
    r_mat = jnp.kron(jnp.eye(C_in, dtype=jnp.float32), uwp_t)                    # (C_in*W, C_in*(W2+2))
    r_mat = jnp.pad(r_mat, ((0, 0), (0, pw - C_in * (W2 + 2))))                  # (C_in*W, PW)

    # banded conv weights: w_mat[dy, c*(W2+2)+p, q*C_out+o] = sum_dx w[o,c,dy,dx] * [p == q+dx]
    # TODO(synk): this slab is O(C_in*C_out*W2^2); for production W2 either tile the W2 axis
    # (grid axis with halo) or revert the column taps to 3 per-dx matmuls (O(C_in*W2*C_out)).
    qp = np.arange(W2 + 2)[:, None]
    qq = np.arange(W2)[None, :]
    sel = np.stack([(qp == qq + dx) for dx in range(3)], 0).astype(np.float32)   # (3, W2+2, W2)
    b5 = jnp.einsum('ocyx,xpq->ycpqo', weight.astype(jnp.float32), jnp.asarray(sel))
    b_mat = b5.reshape(3, C_in * (W2 + 2), nout)
    b_mat = jnp.pad(b_mat, ((0, 0), (0, pw - C_in * (W2 + 2)), (0, 0)))          # (3, PW, nout)

    uh_big = uh_big.astype(jnp.bfloat16)
    r_mat = r_mat.astype(jnp.bfloat16)
    b_mat = b_mat.astype(jnp.bfloat16)

    # input layout: NCHW -> (steps, nb*H, C_in*W), bf16 (wrapper-side layout plumbing)
    x2 = jnp.transpose(x_nchw, (0, 2, 1, 3)).reshape(steps, nb * H, C_in * W).astype(jnp.bfloat16)

    # ---- fused kernel: upsample + conv3x3 + per-step BN partial sums ----
    conv_fn = pl.pallas_call(
        _upsample_conv_kernel,
        out_shape=(jax.ShapeDtypeStruct((steps, nb * H2, nout), jnp.bfloat16),
                   jax.ShapeDtypeStruct((steps, 1, nout), jnp.float32),
                   jax.ShapeDtypeStruct((steps, 1, nout), jnp.float32)),
        grid=(steps,),
        in_specs=[
            pl.BlockSpec((1, nb * H, C_in * W), lambda n: (n, 0, 0)),
            pl.BlockSpec((C_in * W, pw), lambda n: (0, 0)),
            pl.BlockSpec((3 * nb * H2, nb * H), lambda n: (0, 0)),
            pl.BlockSpec((3, pw, nout), lambda n: (0, 0, 0)),
        ],
        out_specs=(
            pl.BlockSpec((1, nb * H2, nout), lambda n: (n, 0, 0)),
            pl.BlockSpec((1, 1, nout), lambda n: (n, 0, 0)),
            pl.BlockSpec((1, 1, nout), lambda n: (n, 0, 0)),
        ),
        compiler_params=pltpu.CompilerParams(
            dimension_semantics=("parallel",),
            vmem_limit_bytes=32 * 1024 * 1024),
    )
    y_pre, ssum, ssq = conv_fn(x2, r_mat, uh_big, b_mat)

    # ---- training-mode BatchNorm stats (biased var, eps=1e-5) from the kernel's fp32 sums ----
    count = float(N * H2 * W2)
    sum_c = jnp.sum(ssum.reshape(-1, W2, C_out), axis=(0, 1))
    sumsq_c = jnp.sum(ssq.reshape(-1, W2, C_out), axis=(0, 1))
    mean = sum_c / count
    var = jnp.maximum(sumsq_c / count - mean * mean, 0.0)   # guard against cancellation
    scale_c = gamma / jnp.sqrt(var + EPS)
    shift_c = beta - mean * scale_c

    # ---- BN affine + ReLU + layout change as plain jnp: XLA fuses into one memory-bound pass ----
    y = y_pre.reshape(N, H2, W2, C_out).astype(jnp.float32)
    y = jnp.maximum(y * scale_c + shift_c, 0.0)
    return jnp.transpose(y, (0, 3, 1, 2))                   # NHWC -> NCHW


# ------------------------------ reference -------------------------------------

def reference_forward(x_nchw, weight, bias, gamma, beta, *, scale=2):
    N, C_in, H, W = x_nchw.shape
    H2, W2 = H * scale, W * scale
    x = jnp.transpose(x_nchw, (0, 2, 3, 1)).astype(jnp.float32)
    uh = _bilinear_matrix(H, H2)
    uw = _bilinear_matrix(W, W2)
    xu = jnp.einsum('ph,nhwc,qw->npqc', uh, x, uw)
    w_hwio = jnp.transpose(weight, (2, 3, 1, 0))
    y = jax.lax.conv_general_dilated(
        xu, w_hwio, window_strides=(1, 1), padding=((1, 1), (1, 1)),
        dimension_numbers=('NHWC', 'HWIO', 'NHWC'))
    y = y + bias.reshape(1, 1, 1, -1)
    mean = jnp.mean(y, axis=(0, 1, 2))
    var = jnp.var(y, axis=(0, 1, 2))
    y = (y - mean) / jnp.sqrt(var + EPS) * gamma + beta
    y = jnp.maximum(y, 0.0)
    return jnp.transpose(y, (0, 3, 1, 2))


if __name__ == "__main__":
    N, C_in, C_out, H, W = 2, 4, 8, 16, 16

    key = jax.random.PRNGKey(0)
    k1, k2, k3, k4, k5 = jax.random.split(key, 5)
    weight = 0.1 * jax.random.normal(k1, (C_out, C_in, 3, 3), dtype=jnp.float32)
    bias = 0.1 * jax.random.normal(k2, (C_out,), dtype=jnp.float32)
    gamma = 1.0 + 0.1 * jax.random.normal(k3, (C_out,), dtype=jnp.float32)
    beta = 0.1 * jax.random.normal(k4, (C_out,), dtype=jnp.float32)
    x = jax.random.normal(k5, (N, C_in, H, W), dtype=jnp.float32)

    out = jax.block_until_ready(upsample_block_forward(x, weight, bias, gamma, beta, scale=2))
    ref = jax.block_until_ready(reference_forward(x, weight, bias, gamma, beta, scale=2))

    assert out.shape == (N, C_out, 2 * H, 2 * W), out.shape
    # tolerance accounts for bf16 MXU operands + the bf16 HBM round trip of the pre-BN activations
    np.testing.assert_allclose(np.asarray(out), np.asarray(ref), rtol=3e-2, atol=3e-2)

    print("KERNEL_OK")
</pallas_src>

<mosaic_0001>
module attributes {stable_mosaic.version = 11 : i64} {
  func.func @_upsample_conv_kernel(%arg0: i32, %arg1: memref<1x32x64xbf16, #tpu.memory_space<vmem>>, %arg2: memref<64x256xbf16, #tpu.memory_space<vmem>>, %arg3: memref<192x32xbf16, #tpu.memory_space<vmem>>, %arg4: memref<3x256x256xbf16, #tpu.memory_space<vmem>>, %arg5: memref<1x64x256xbf16, #tpu.memory_space<vmem>>, %arg6: memref<1x1x256xf32, #tpu.memory_space<vmem>>, %arg7: memref<1x1x256xf32, #tpu.memory_space<vmem>>) attributes {dimension_semantics = [#tpu.dimension_semantics<parallel>], iteration_bounds = array<i64: 1>, scalar_prefetch = 0 : i64, scratch_operands = 0 : i64, tpu.core_type = #tpu.core_type<tc>, window_params = [{transform_indices = @transform_0, window_bounds = array<i64: 1, 32, 64>}, {pipeline_mode = #tpu.pipeline_mode<synchronous>, transform_indices = @transform_1, window_bounds = array<i64: 64, 256>}, {pipeline_mode = #tpu.pipeline_mode<synchronous>, transform_indices = @transform_2, window_bounds = array<i64: 192, 32>}, {pipeline_mode = #tpu.pipeline_mode<synchronous>, transform_indices = @transform_3, window_bounds = array<i64: 3, 256, 256>}, {transform_indices = @transform_4, window_bounds = array<i64: 1, 64, 256>}, {transform_indices = @transform_5, window_bounds = array<i64: 1, 1, 256>}, {transform_indices = @transform_6, window_bounds = array<i64: 1, 1, 256>}]} {
    %c0 = arith.constant 0 : index
    %c0_0 = arith.constant 0 : index
    %c0_1 = arith.constant 0 : index
    %0 = vector.load %arg1[%c0, %c0_0, %c0_1] : memref<1x32x64xbf16, #tpu.memory_space<vmem>>, vector<1x32x64xbf16>
    %1 = vector.shape_cast %0 : vector<1x32x64xbf16> to vector<32x64xbf16>
    %c0_2 = arith.constant 0 : index
    %c0_3 = arith.constant 0 : index
    %2 = vector.load %arg2[%c0_2, %c0_3] : memref<64x256xbf16, #tpu.memory_space<vmem>>, vector<64x256xbf16>
    %cst = arith.constant dense<0.000000e+00> : vector<32x256xf32>
    %3 = tpu.matmul %1, %2, %cst {dimension_numbers = #tpu.dot_dimension_numbers<[1], [0], [0], [1], [0, 0, 1, 1], [], []>} : vector<32x64xbf16>, vector<64x256xbf16>, vector<32x256xf32> -> vector<32x256xf32>
    %c0_4 = arith.constant 0 : index
    %c0_5 = arith.constant 0 : index
    %4 = vector.load %arg3[%c0_4, %c0_5] : memref<192x32xbf16, #tpu.memory_space<vmem>>, vector<192x32xbf16>
    %5 = arith.truncf %3 : vector<32x256xf32> to vector<32x256xbf16>
    %cst_6 = arith.constant dense<0.000000e+00> : vector<192x256xf32>
    %6 = tpu.matmul %4, %5, %cst_6 {dimension_numbers = #tpu.dot_dimension_numbers<[1], [0], [0], [1], [0, 0, 1, 1], [], []>} : vector<192x32xbf16>, vector<32x256xbf16>, vector<192x256xf32> -> vector<192x256xf32>
    %7 = arith.truncf %6 : vector<192x256xf32> to vector<192x256xbf16>
    %8 = vector.extract_strided_slice %7 {offsets = [0, 0], sizes = [64, 256], strides = [1, 1]} : vector<192x256xbf16> to vector<64x256xbf16>
    %c0_7 = arith.constant 0 : index
    %c0_8 = arith.constant 0 : index
    %c0_9 = arith.constant 0 : index
    %9 = vector.load %arg4[%c0_7, %c0_8, %c0_9] : memref<3x256x256xbf16, #tpu.memory_space<vmem>>, vector<1x256x256xbf16>
    %10 = vector.shape_cast %9 : vector<1x256x256xbf16> to vector<256x256xbf16>
    %cst_10 = arith.constant dense<0.000000e+00> : vector<64x256xf32>
    %11 = tpu.matmul %8, %10, %cst_10 {dimension_numbers = #tpu.dot_dimension_numbers<[1], [0], [0], [1], [0, 0, 1, 1], [], []>} : vector<64x256xbf16>, vector<256x256xbf16>, vector<64x256xf32> -> vector<64x256xf32>
    %12 = vector.extract_strided_slice %7 {offsets = [64, 0], sizes = [64, 256], strides = [1, 1]} : vector<192x256xbf16> to vector<64x256xbf16>
    %c1 = arith.constant 1 : index
    %c0_11 = arith.constant 0 : index
    %c0_12 = arith.constant 0 : index
    %13 = vector.load %arg4[%c1, %c0_11, %c0_12] : memref<3x256x256xbf16, #tpu.memory_space<vmem>>, vector<1x256x256xbf16>
    %14 = vector.shape_cast %13 : vector<1x256x256xbf16> to vector<256x256xbf16>
    %cst_13 = arith.constant dense<0.000000e+00> : vector<64x256xf32>
    %15 = tpu.matmul %12, %14, %cst_13 {dimension_numbers = #tpu.dot_dimension_numbers<[1], [0], [0], [1], [0, 0, 1, 1], [], []>} : vector<64x256xbf16>, vector<256x256xbf16>, vector<64x256xf32> -> vector<64x256xf32>
    %16 = arith.addf %11, %15 : vector<64x256xf32>
    %17 = vector.extract_strided_slice %7 {offsets = [128, 0], sizes = [64, 256], strides = [1, 1]} : vector<192x256xbf16> to vector<64x256xbf16>
    %c2 = arith.constant 2 : index
    %c0_14 = arith.constant 0 : index
    %c0_15 = arith.constant 0 : index
    %18 = vector.load %arg4[%c2, %c0_14, %c0_15] : memref<3x256x256xbf16, #tpu.memory_space<vmem>>, vector<1x256x256xbf16>
    %19 = vector.shape_cast %18 : vector<1x256x256xbf16> to vector<256x256xbf16>
    %cst_16 = arith.constant dense<0.000000e+00> : vector<64x256xf32>
    %20 = tpu.matmul %17, %19, %cst_16 {dimension_numbers = #tpu.dot_dimension_numbers<[1], [0], [0], [1], [0, 0, 1, 1], [], []>} : vector<64x256xbf16>, vector<256x256xbf16>, vector<64x256xf32> -> vector<64x256xf32>
    %21 = arith.addf %16, %20 : vector<64x256xf32>
    %22 = arith.truncf %21 : vector<64x256xf32> to vector<64x256xbf16>
    %c0_17 = arith.constant 0 : index
    %c0_18 = arith.constant 0 : index
    %c0_19 = arith.constant 0 : index
    %23 = vector.load %arg5[%c0_17, %c0_18, %c0_19] : memref<1x64x256xbf16, #tpu.memory_space<vmem>>, vector<1x64x256xbf16>
    %24 = vector.shape_cast %23 : vector<1x64x256xbf16> to vector<64x256xbf16>
    %25 = vector.shape_cast %22 : vector<64x256xbf16> to vector<1x64x256xbf16>
    tpu.vector_store %arg5[%c0_17, %c0_18, %c0_19], %25 {strides = array<i32>} : memref<1x64x256xbf16, #tpu.memory_space<vmem>>, vector<1x64x256xbf16>,
    %cst_20 = arith.constant dense<0.000000e+00> : vector<256xf32>
    %26 = vector.multi_reduction <add>, %21, %cst_20 [0] : vector<64x256xf32> to vector<256xf32>
    %27 = vector.shape_cast %26 : vector<256xf32> to vector<1x256xf32>
    %c0_21 = arith.constant 0 : index
    %c0_22 = arith.constant 0 : index
    %c0_23 = arith.constant 0 : index
    %28 = vector.load %arg6[%c0_21, %c0_22, %c0_23] : memref<1x1x256xf32, #tpu.memory_space<vmem>>, vector<1x1x256xf32>
    %29 = vector.shape_cast %28 : vector<1x1x256xf32> to vector<1x256xf32>
    %30 = vector.shape_cast %27 : vector<1x256xf32> to vector<1x1x256xf32>
    tpu.vector_store %arg6[%c0_21, %c0_22, %c0_23], %30 {strides = array<i32>} : memref<1x1x256xf32, #tpu.memory_space<vmem>>, vector<1x1x256xf32>,
    %31 = arith.mulf %21, %21 : vector<64x256xf32>
    %cst_24 = arith.constant dense<0.000000e+00> : vector<256xf32>
    %32 = vector.multi_reduction <add>, %31, %cst_24 [0] : vector<64x256xf32> to vector<256xf32>
    %33 = vector.shape_cast %32 : vector<256xf32> to vector<1x256xf32>
    %c0_25 = arith.constant 0 : index
    %c0_26 = arith.constant 0 : index
    %c0_27 = arith.constant 0 : index
    %34 = vector.load %arg7[%c0_25, %c0_26, %c0_27] : memref<1x1x256xf32, #tpu.memory_space<vmem>>, vector<1x1x256xf32>
    %35 = vector.shape_cast %34 : vector<1x1x256xf32> to vector<1x256xf32>
    %36 = vector.shape_cast %33 : vector<1x256xf32> to vector<1x1x256xf32>
    tpu.vector_store %arg7[%c0_25, %c0_26, %c0_27], %36 {strides = array<i32>} : memref<1x1x256xf32, #tpu.memory_space<vmem>>, vector<1x1x256xf32>,
    return
  }
  func.func @transform_0(%arg0: i32) -> (i32, i32, i32) {
    %c0_i32 = arith.constant 0 : i32
    %c0_i32_0 = arith.constant 0 : i32
    %c0_i32_1 = arith.constant 0 : i32
    return %arg0, %c0_i32, %c0_i32_0 : i32, i32, i32
  }
  func.func @transform_1(%arg0: i32) -> (i32, i32) {
    %c0_i32 = arith.constant 0 : i32
    %c0_i32_0 = arith.constant 0 : i32
    %c0_i32_1 = arith.constant 0 : i32
    return %c0_i32, %c0_i32_0 : i32, i32
  }
  func.func @transform_2(%arg0: i32) -> (i32, i32) {
    %c0_i32 = arith.constant 0 : i32
    %c0_i32_0 = arith.constant 0 : i32
    %c0_i32_1 = arith.constant 0 : i32
    return %c0_i32, %c0_i32_0 : i32, i32
  }
  func.func @transform_3(%arg0: i32) -> (i32, i32, i32) {
    %c0_i32 = arith.constant 0 : i32
    %c0_i32_0 = arith.constant 0 : i32
    %c0_i32_1 = arith.constant 0 : i32
    %c0_i32_2 = arith.constant 0 : i32
    return %c0_i32, %c0_i32_0, %c0_i32_1 : i32, i32, i32
  }
  func.func @transform_4(%arg0: i32) -> (i32, i32, i32) {
    %c0_i32 = arith.constant 0 : i32
    %c0_i32_0 = arith.constant 0 : i32
    %c0_i32_1 = arith.constant 0 : i32
    return %arg0, %c0_i32, %c0_i32_0 : i32, i32, i32
  }
  func.func @transform_5(%arg0: i32) -> (i32, i32, i32) {
    %c0_i32 = arith.constant 0 : i32
    %c0_i32_0 = arith.constant 0 : i32
    %c0_i32_1 = arith.constant 0 : i32
    return %arg0, %c0_i32, %c0_i32_0 : i32, i32, i32
  }
  func.func @transform_6(%arg0: i32) -> (i32, i32, i32) {
    %c0_i32 = arith.constant 0 : i32
    %c0_i32_0 = arith.constant 0 : i32
    %c0_i32_1 = arith.constant 0 : i32
    return %arg0, %c0_i32, %c0_i32_0 : i32, i32, i32
  }
}

</mosaic_0001>

<bundles_post_ra>
// kernel: tpu_custom_call.1
= control target key start
LH: loop header
LB: loop body
LE: loop exit
PB: predicated region body
PF: predicated region fallthrough
CT: control target
= control target key end

     0   :  { %12 = vsyncpa [#allocation3], 0  ;;  %s2145_s0 = inlined_call_operand.vmem [shape: bf16[1,32,64], index: 0, kind: input, shape index: {}]   ;;  %s2146_s1 = inlined_call_operand.vmem [shape: bf16[64,256], index: 1, kind: input, shape index: {}]   ;;  %s2147_s2 = inlined_call_operand.vmem [shape: bf16[192,32], index: 2, kind: input, shape index: {}]   ;;  %s2148_s3 = inlined_call_operand.hbm [shape: bf16[3,256,256], index: 3, kind: input, shape index: {}]   ;;  %s2149_s4 = inlined_call_operand.hbm [shape: bf16[1,64,256], index: 4, kind: output, shape index: {0}]   ;;  %s2150_s5 = inlined_call_operand.hbm [shape: f32[1,1,256], index: 5, kind: output, shape index: {1}]   ;;  %s2151_s6 = inlined_call_operand.hbm [shape: f32[1,1,256], index: 6, kind: output, shape index: {2}]  }
   0x1   :  { %13 = vsyncpa [#allocation4], 0 }
   0x2   :  { %14 = vsyncpa [#allocation7], 0  ;;  %s1936_s21 = smov [#allocation2]   ;;  %s1842_s25 = scalar_lea.hbm %s2148_s3, 12288 }
   0x3   :  { %s26_s22 = sshll.u32 %s1936_s21, 4  ;;  %p1843_p0 = scmp.ne.s32.totalorder %s2148_s3, %s1842_s25  ;;  %s27_s22 = int_to_ptr.vmem [resolvable:$true] %s26_s22 }
   0x4   :  { %p1846_p1 = scmp.lt.u32.totalorder %s1842_s25, %s2148_s3 }
   0x6   :  { %p1848_p2 = pnand %p1846_p1, %p1843_p0 }
   0x8   :  { %1851 = shalt.err (!%p1848_p2)
}
   0x9   :  { %s1852_s30 = scalar_lea.vmem %s27_s22, 12288  ;;  %p1857_p4 = scmp.lt.s32.totalorder %s27_s22, %s27_s22 }
   0xa   :  { %p1853_p3 = scmp.ne.s32.totalorder %s27_s22, %s1852_s30  ;;  %p1858_p5 = scmp.lt.s32.totalorder %s1852_s30, %s1852_s30 }
   0xc   :  { %p1859_p6 = por %p1858_p5, %p1857_p4 }
   0xe   :  { %p1860_p7 = pnand %p1859_p6, %p1853_p3 }
  0x10   :  { %1863 = shalt.err (!%p1860_p7)
}
  0x11   :  { %s1937_s7 = smov 128   ;;  %s1938_s8 = smov 8  }
  0x12   :  { %32 = dma.hbm_to_vmem [thread:$0]  %s2148_s3, 12288, %s27_s22, [#allocation3], %s1937_s7, %s1937_s7, %s1938_s8  }
  0x13   :  { %1930 = dma.done.wait [#allocation3], 12288  }
  0x14   :  { %1931 = vsyncadd [#allocation3], 4294955008  ;;  %v1939_v0 = vmov 0   ;;  %v1672_v1 = vld [vmem:[%s2146_s1 + $0x4] ss:$8 sps:$4 sm:$0xff]   ;;  %vm99_vm0 = vcmask 523264  }
  0x15   :  { %138 = vmatprep.mubr.bf16.mxu1 %v1939_v0  ;;  %v1674_v2 = vld [vmem:[%s2146_s1] ss:$8 sps:$4 sm:$0xff]   ;;  %106 = vmatprep.subr.bf16.mxu1 %v1672_v1  ;;  %v1675_v3 = vld [vmem:[%s2146_s1 + $0x14] ss:$8 sps:$4 sm:$0xff]   ;;  %v1677_v4 = vld [vmem:[%s2146_s1 + $0x10] ss:$8 sps:$4 sm:$0xff]  }
  0x16   :  { %107 = vmatpush1.bf16.msra.mxu1 %v1674_v2  ;;  %v1678_v5 = vld [vmem:[%s2146_s1 + $0x24] ss:$8 sps:$4 sm:$0xff]   ;;  %v1680_v6 = vld [vmem:[%s2146_s1 + $0x20] ss:$8 sps:$4 sm:$0xff]   ;;  %v1681_v7 = vld [vmem:[%s2146_s1 + $0x34] ss:$8 sps:$4 sm:$0xff]  }
  0x17   :  { %108 = vmatprep.subr.bf16.mxu1 %v1675_v3  ;;  %v1683_v8 = vld [vmem:[%s2146_s1 + $0x30] ss:$8 sps:$4 sm:$0xff]   ;;  %v1684_v9 = vld [vmem:[%s2145_s0] sm:$0xff]   ;;  %v1685_v10 = vld [vmem:[%s2145_s0 + $0x8] sm:$0xff]   ;;  %vm247_vm1 = vcmask 261120  }
  0x18   :  { %v1698_v11 = vld [vmem:[#allocation2 + $0x4] ss:$8 sps:$4 sm:$0xff]   ;;  %v1700_v12 = vld [vmem:[#allocation2] ss:$8 sps:$4 sm:$0xff]   ;;  %v1701_v13 = vld [vmem:[#allocation2 + $0x14] ss:$8 sps:$4 sm:$0xff]  }
  0x19   :  { %919 = vmatprep.subr.bf16.mxu0 %v1698_v11  ;;  %v1703_v14 = vld [vmem:[#allocation2 + $0x10] ss:$8 sps:$4 sm:$0xff]   ;;  %v1704_v15 = vld [vmem:[#allocation2 + $0x24] ss:$8 sps:$4 sm:$0xff]   ;;  %v1706_v16 = vld [vmem:[#allocation2 + $0x20] ss:$8 sps:$4 sm:$0xff]  }
  0x1a   :  { %109 = vmatpush1.bf16.msra.mxu1 %v1677_v4  ;;  %920 = vmatpush1.bf16.msra.mxu0 %v1700_v12  ;;  %v1707_v17 = vld [vmem:[#allocation2 + $0x34] ss:$8 sps:$4 sm:$0xff]   ;;  %v1709_v18 = vld [vmem:[#allocation2 + $0x30] ss:$8 sps:$4 sm:$0xff]   ;;  %v1710_v19 = vld [vmem:[#allocation2 + $0x44] ss:$8 sps:$4 sm:$0xff]  }
  0x1b   :  { %110 = vmatprep.subr.bf16.mxu1 %v1678_v5  ;;  %921 = vmatprep.subr.bf16.mxu0 %v1701_v13  ;;  %v1712_v20 = vld [vmem:[#allocation2 + $0x40] ss:$8 sps:$4 sm:$0xff]   ;;  %v1713_v21 = vld [vmem:[#allocation2 + $0x54] ss:$8 sps:$4 sm:$0xff]   ;;  %v1715_v22 = vld [vmem:[#allocation2 + $0x50] ss:$8 sps:$4 sm:$0xff]  }
  0x1c   :  { %v1716_v23 = vld [vmem:[#allocation2 + $0x64] ss:$8 sps:$4 sm:$0xff]   ;;  %v1718_v26 = vld [vmem:[#allocation2 + $0x60] ss:$8 sps:$4 sm:$0xff]   ;;  %v1719_v28 = vld [vmem:[#allocation2 + $0x74] ss:$8 sps:$4 sm:$0xff]  }
  0x1d   :  { %v1721_v32 = vld [vmem:[#allocation2 + $0x70] ss:$8 sps:$4 sm:$0xff]   ;;  %v1725_v33 = vld [vmem:[#allocation2 + $0x84] ss:$8 sps:$4 sm:$0xff]   ;;  %v1727_v36 = vld [vmem:[#allocation2 + $0x80] ss:$8 sps:$4 sm:$0xff]  }
  0x1e   :  { %111 = vmatpush1.bf16.msra.mxu1 %v1680_v6  ;;  %922 = vmatpush1.bf16.msra.mxu0 %v1703_v14  ;;  %v1731_v38 = vld [vmem:[#allocation2 + $0x94] ss:$8 sps:$4 sm:$0xff]   ;;  %v1724_v42 = vld [vmem:[#allocation2 + $0x104] ss:$8 sps:$4 sm:$0xff]   ;;  %v1733_v43 = vld [vmem:[#allocation2 + $0x90] ss:$8 sps:$4 sm:$0xff]  }
  0x1f   :  { %112 = vmatprep.subr.bf16.mxu1 %v1681_v7  ;;  %923 = vmatprep.subr.bf16.mxu0 %v1704_v15  ;;  %v1686_v44 = vld [vmem:[%s2147_s2] sm:$0xff]   ;;  %v1730_v47 = vld [vmem:[#allocation2 + $0x114] ss:$8 sps:$4 sm:$0xff]   ;;  %v1728_v50 = vld [vmem:[#allocation2 + $0x110] ss:$8 sps:$4 sm:$0xff]  }
  0x20   :  { %v1737_v45 = vld [vmem:[#allocation2 + $0xa4] ss:$8 sps:$4 sm:$0xff]   ;;  %v1722_v46 = vld [vmem:[#allocation2 + $0x100] ss:$8 sps:$4 sm:$0xff]   ;;  %v1743_v49 = vld [vmem:[#allocation2 + $0xb4] ss:$8 sps:$4 sm:$0xff]  }
  0x21   :  { %v1739_v48 = vld [vmem:[#allocation2 + $0xa0] ss:$8 sps:$4 sm:$0xff]   ;;  %v1736_v51 = vld [vmem:[#allocation2 + $0x124] ss:$8 sps:$4 sm:$0xff]   ;;  %v1745_v52 = vld [vmem:[#allocation2 + $0xb0] ss:$8 sps:$4 sm:$0xff]  }
  0x22   :  { %113 = vmatpush1.bf16.msra.mxu1 %v1683_v8  ;;  %924 = vmatpush1.bf16.msra.mxu0 %v1706_v16  ;;  %v1687_v53 = vld [vmem:[%s2147_s2 + $0x8] sm:$0xff]   ;;  %v1742_v56 = vld [vmem:[#allocation2 + $0x134] ss:$8 sps:$4 sm:$0xff]   ;;  %v1740_v59 = vld [vmem:[#allocation2 + $0x130] ss:$8 sps:$4 sm:$0xff]  }
  0x23   :  { %925 = vmatprep.subr.bf16.mxu0 %v1707_v17  ;;  %v1749_v54 = vld [vmem:[#allocation2 + $0xc4] ss:$8 sps:$4 sm:$0xff]   ;;  %v1734_v55 = vld [vmem:[#allocation2 + $0x120] ss:$8 sps:$4 sm:$0xff]   ;;  %v1755_v58 = vld [vmem:[#allocation2 + $0xd4] ss:$8 sps:$4 sm:$0xff]  }
  0x24   :  { %v1751_v57 = vld [vmem:[#allocation2 + $0xc0] ss:$8 sps:$4 sm:$0xff]   ;;  %v1748_v60 = vld [vmem:[#allocation2 + $0x144] ss:$8 sps:$4 sm:$0xff]   ;;  %v1757_v61 = vld [vmem:[#allocation2 + $0xd0] ss:$8 sps:$4 sm:$0xff]  }
  0x25   :  { %1494 = vmatmul.mubr.msk.bf16.vlgmr.msra.gmra.mrb[0].mxu1 %vm99_vm0, %v1684_v9  ;;  %v1688_v62 = vld [vmem:[%s2147_s2 + $0x10] sm:$0xff]   ;;  %v1761_v63 = vld [vmem:[#allocation2 + $0xe4] ss:$8 sps:$4 sm:$0xff]   ;;  %v1746_v1 = vld [vmem:[#allocation2 + $0x140] ss:$8 sps:$4 sm:$0xff]  }
  0x26   :  { %148 = vmatprep.mubr.bf16.mxu1 %v1939_v0  ;;  %926 = vmatpush1.bf16.msra.mxu0 %v1709_v18  ;;  %v1754_v2 = vld [vmem:[#allocation2 + $0x154] ss:$8 sps:$4 sm:$0xff]   ;;  %v1763_v3 = vld [vmem:[#allocation2 + $0xe0] ss:$8 sps:$4 sm:$0xff]   ;;  %v1752_v4 = vld [vmem:[#allocation2 + $0x150] ss:$8 sps:$4 sm:$0xff]  }
  0x27   :  { %927 = vmatprep.subr.bf16.mxu0 %v1710_v19  ;;  %v1760_v5 = vld [vmem:[#allocation2 + $0x164] ss:$8 sps:$4 sm:$0xff]   ;;  %v1689_v6 = vld [vmem:[%s2147_s2 + $0x18] sm:$0xff]   ;;  %v1758_v7 = vld [vmem:[#allocation2 + $0x160] ss:$8 sps:$4 sm:$0xff]  }
  0x28   :  { %v1690_v8 = vld [vmem:[%s2147_s2 + $0x20] sm:$0xff]   ;;  %v1691_v9 = vld [vmem:[%s2147_s2 + $0x28] sm:$0xff]   ;;  %v1693_v11 = vld [vmem:[%s2147_s2 + $0x38] sm:$0xff]  }
  0x29   :  { %v1694_v12 = vld [vmem:[%s2147_s2 + $0x40] sm:$0xff]   ;;  %v1695_v13 = vld [vmem:[%s2147_s2 + $0x48] sm:$0xff]   ;;  %v1696_v14 = vld [vmem:[%s2147_s2 + $0x50] sm:$0xff]  }
  0x2a   :  { %928 = vmatpush1.bf16.msra.mxu0 %v1712_v20  ;;  %v1697_v15 = vld [vmem:[%s2147_s2 + $0x58] sm:$0xff]   ;;  %v1772_v20 = vld [vmem:[#allocation2 + $0x184] ss:$8 sps:$4 sm:$0xff]  }
  0x2b   :  { %929 = vmatprep.subr.bf16.mxu0 %v1713_v21  ;;  %v1766_v16 = vld [vmem:[#allocation2 + $0x174] ss:$8 sps:$4 sm:$0xff]   ;;  %v1764_v18 = vld [vmem:[#allocation2 + $0x170] ss:$8 sps:$4 sm:$0xff]   ;;  %v1770_v21 = vld [vmem:[#allocation2 + $0x180] ss:$8 sps:$4 sm:$0xff]  }
  0x2c   :  { %v1767_v17 = vld [vmem:[#allocation2 + $0xf4] ss:$8 sps:$4 sm:$0xff]   ;;  %v1769_v19 = vld [vmem:[#allocation2 + $0xf0] ss:$8 sps:$4 sm:$0xff]  }
  0x2d   :  { %1495 = vmatmul.mubr.msk.bf16.gmra.mrb[4].mxu1 %vm99_vm0, %v1685_v10  ;;  %v1692_v10 = vld [vmem:[%s2147_s2 + $0x30] sm:$0xff]   ;;  %s1940_s2 = smov [#allocation5]  }
  0x2e   :  { %316 = vmatprep.mubr.bf16.mxu1 %v1939_v0  ;;  %930 = vmatpush1.bf16.msra.mxu0 %v1715_v22  ;;  %v1775_v22 = vld [vmem:[#allocation2 + $0x204] ss:$8 sps:$4 sm:$0xff]   ;;  %s1445_s29 = sshll.u32 %s1940_s2, 4  ;;  %s1446_s29 = int_to_ptr.vmem [resolvable:$true] %s1445_s29 }
  0x2f   :  { %931 = vmatprep.subr.bf16.mxu0 %v1716_v23  ;;  %v1776_v23 = vld [vmem:[#allocation2 + $0x190] ss:$8 sps:$4 sm:$0xff]   ;;  %s1864_s0 = scalar_lea.vmem %s1446_s29, 1024  ;;  %p1869_p9 = scmp.lt.s32.totalorder %s1446_s29, %s1446_s29 }
  0x30   :  { %p1865_p8 = scmp.ne.s32.totalorder %s1446_s29, %s1864_s0  ;;  %p1870_p10 = scmp.lt.s32.totalorder %s1864_s0, %s1864_s0 }
  0x32   :  { %932 = vmatpush1.bf16.msra.mxu0 %v1718_v26  ;;  %v1790_v26 = vld [vmem:[#allocation2 + $0x1b4] ss:$8 sps:$4 sm:$0xff]   ;;  %p1871_p11 = por %p1870_p10, %p1869_p9 }
  0x33   :  { %933 = vmatprep.subr.bf16.mxu0 %v1719_v28  ;;  %v1794_v28 = vld [vmem:[#allocation2 + $0x1c0] ss:$8 sps:$4 sm:$0xff]  }
  0x34   :  { %p1872_p12 = pnand %p1871_p11, %p1865_p8 }
  0x36   :  { %934 = vmatpush1.bf16.msra.mxu0 %v1721_v32  ;;  %v1806_v32 = vld [vmem:[#allocation2 + $0x1e0] ss:$8 sps:$4 sm:$0xff]  }
  0x37   :  { %935 = vmatprep.subr.bf16.mxu0 %v1725_v33  ;;  %v1808_v33 = vld [vmem:[#allocation2 + $0x1e4] ss:$8 sps:$4 sm:$0xff]  }
  0x3a   :  { %936 = vmatpush1.bf16.msra.mxu0 %v1727_v36 }
  0x3b   :  { %937 = vmatprep.subr.bf16.mxu0 %v1731_v38 }
  0x3e   :  { %938 = vmatpush1.bf16.msra.mxu0 %v1733_v43  ;;  %v1781_v43 = vld [vmem:[#allocation2 + $0x214] ss:$8 sps:$4 sm:$0xff]  }
  0x3f   :  { %939 = vmatprep.subr.bf16.mxu0 %v1737_v45  ;;  %v1779_v45 = vld [vmem:[#allocation2 + $0x210] ss:$8 sps:$4 sm:$0xff]  }
  0x42   :  { %940 = vmatpush1.bf16.msra.mxu0 %v1739_v48 }
  0x43   :  { %941 = vmatprep.subr.bf16.mxu0 %v1743_v49 }
  0x46   :  { %942 = vmatpush1.bf16.msra.mxu0 %v1745_v52  ;;  %v1785_v52 = vld [vmem:[#allocation2 + $0x220] ss:$8 sps:$4 sm:$0xff]  }
  0x47   :  { %943 = vmatprep.subr.bf16.mxu0 %v1749_v54 }
  0x4a   :  { %944 = vmatpush1.bf16.msra.mxu0 %v1751_v57  ;;  %v1799_v57 = vld [vmem:[#allocation2 + $0x244] ss:$8 sps:$4 sm:$0xff]  }
  0x4b   :  { %945 = vmatprep.subr.bf16.mxu0 %v1755_v58 }
  0x4e   :  { %946 = vmatpush1.bf16.msra.mxu0 %v1757_v61 }
  0x4f   :  { %947 = vmatprep.subr.bf16.mxu0 %v1761_v63  ;;  %v1805_v63 = vld [vmem:[#allocation2 + $0x254] ss:$8 sps:$4 sm:$0xff]  }
  0x52   :  { %948 = vmatpush1.bf16.msra.mxu0 %v1763_v3 }
  0x53   :  { %949 = vmatprep.subr.bf16.mxu0 %v1767_v17 }
  0x56   :  { %950 = vmatpush1.bf16.msra.mxu0 %v1769_v19  ;;  %v1818_v19 = vld [vmem:[#allocation2 + $0x280] ss:$8 sps:$4 sm:$0xff]  }
  0x57   :  { %1185 = vmatprep.subr.bf16.mxu0 %v1775_v22  ;;  %v1821_v22 = vld [vmem:[#allocation2 + $0x290] ss:$8 sps:$4 sm:$0xff]  }
  0xf8   :  { %v140_v24 = vpop.f32.mrb[0].mxu1 }
  0xf9   :  { %v142_v25 = vpop.f32.mrb[1].mxu1 }
  0xfa   :  { %v144_v27 = vpop.f32.mrb[2].mxu1 }
  0xfb   :  { %v183_v29 = vpack.c.bf16 %v144_v27, %v140_v24  ;;  %v146_v30 = vpop.f32.mrb[3].mxu1  ;;  %v1782_v24 = vld [vmem:[#allocation2 + $0x1a0] ss:$8 sps:$4 sm:$0xff]   ;;  %v1788_v27 = vld [vmem:[#allocation2 + $0x1b0] ss:$8 sps:$4 sm:$0xff]  }
  0xfc   :  { %v184_v31 = vpack.c.bf16 %v146_v30, %v142_v25  ;;  %v1784_v25 = vld [vmem:[#allocation2 + $0x1a4] ss:$8 sps:$4 sm:$0xff]   ;;  %v1802_v30 = vld [vmem:[#allocation2 + $0x1d4] ss:$8 sps:$4 sm:$0xff]  }
  0xfe   :  { %284 = vmatprep.subr.bf16.mxu1 %v184_v31  ;;  %v1800_v31 = vld [vmem:[#allocation2 + $0x1d0] ss:$8 sps:$4 sm:$0xff]  }
  0xff   :  { %285 = vmatpush1.bf16.msra.mxu1 %v183_v29  ;;  %v1796_v29 = vld [vmem:[#allocation2 + $0x1c4] ss:$8 sps:$4 sm:$0xff]  }
 0x100   :  { %v150_v34 = vpop.f32.mrb[4].mxu1 }
 0x101   :  { %v152_v35 = vpop.f32.mrb[5].mxu1 }
 0x102   :  { %v154_v37 = vpop.f32.mrb[6].mxu1 }
 0x103   :  { %v185_v39 = vpack.c.bf16 %v154_v37, %v150_v34  ;;  %v156_v40 = vpop.f32.mrb[7].mxu1  ;;  %v1814_v34 = vld [vmem:[#allocation2 + $0x1f4] ss:$8 sps:$4 sm:$0xff]  }
 0x104   :  { %v186_v41 = vpack.c.bf16 %v156_v40, %v152_v35  ;;  %v1812_v35 = vld [vmem:[#allocation2 + $0x1f0] ss:$8 sps:$4 sm:$0xff]  }
 0x106   :  { %286 = vmatprep.subr.bf16.mxu1 %v186_v41 }
 0x107   :  { %287 = vmatpush1.bf16.msra.mxu1 %v185_v39 }
 0x108   :  { %686 = vmatprep.subr.bf16.mxu1 %v1724_v42  ;;  %v1773_v42 = vld [vmem:[#allocation2 + $0x200] ss:$8 sps:$4 sm:$0xff]  }
 0x10a   :  { %1508 = vmatmul.mubr.msk.bf16.vlgmr.msra.gmra.mrb[8].mxu1 %vm247_vm1, %v1686_v44 }
 0x10b   :  { %326 = vmatprep.mubr.bf16.mxu1 %v1939_v0  ;;  %687 = vmatpush1.bf16.msra.mxu1 %v1722_v46 }
 0x10c   :  { %688 = vmatprep.subr.bf16.mxu1 %v1730_v47  ;;  %v1787_v47 = vld [vmem:[#allocation2 + $0x224] ss:$8 sps:$4 sm:$0xff]  }
 0x10f   :  { %689 = vmatpush1.bf16.msra.mxu1 %v1728_v50 }
 0x110   :  { %690 = vmatprep.subr.bf16.mxu1 %v1736_v51 }
 0x112   :  { %1509 = vmatmul.mubr.msk.bf16.gmra.mrb[12].mxu1 %vm247_vm1, %v1687_v53  ;;  %v1793_v53 = vld [vmem:[#allocation2 + $0x234] ss:$8 sps:$4 sm:$0xff]  }
 0x113   :  { %336 = vmatprep.mubr.bf16.mxu1 %v1939_v0  ;;  %691 = vmatpush1.bf16.msra.mxu1 %v1734_v55  ;;  %v1791_v55 = vld [vmem:[#allocation2 + $0x230] ss:$8 sps:$4 sm:$0xff]  }
 0x114   :  { %692 = vmatprep.subr.bf16.mxu1 %v1742_v56 }
 0x117   :  { %693 = vmatpush1.bf16.msra.mxu1 %v1740_v59 }
 0x118   :  { %694 = vmatprep.subr.bf16.mxu1 %v1748_v60 }
 0x11a   :  { %1510 = vmatmul.mubr.msk.bf16.gmra.mrb[16].mxu1 %vm247_vm1, %v1688_v62  ;;  %v1797_v62 = vld [vmem:[#allocation2 + $0x240] ss:$8 sps:$4 sm:$0xff]  }
 0x11b   :  { %346 = vmatprep.mubr.bf16.mxu1 %v1939_v0  ;;  %695 = vmatpush1.bf16.msra.mxu1 %v1746_v1 }
 0x11c   :  { %696 = vmatprep.subr.bf16.mxu1 %v1754_v2  ;;  %v1803_v2 = vld [vmem:[#allocation2 + $0x250] ss:$8 sps:$4 sm:$0xff]  }
 0x11f   :  { %697 = vmatpush1.bf16.msra.mxu1 %v1752_v4  ;;  %v1811_v4 = vld [vmem:[#allocation2 + $0x264] ss:$8 sps:$4 sm:$0xff]  }
 0x120   :  { %698 = vmatprep.subr.bf16.mxu1 %v1760_v5 }
 0x122   :  { %1511 = vmatmul.mubr.msk.bf16.gmra.mrb[20].mxu1 %vm247_vm1, %v1689_v6 }
 0x123   :  { %356 = vmatprep.mubr.bf16.mxu1 %v1939_v0  ;;  %699 = vmatpush1.bf16.msra.mxu1 %v1758_v7 }
 0x124   :  { %700 = vmatprep.subr.bf16.mxu1 %v1766_v16 }
 0x127   :  { %701 = vmatpush1.bf16.msra.mxu1 %v1764_v18 }
 0x128   :  { %702 = vmatprep.subr.bf16.mxu1 %v1772_v20  ;;  %v1823_v20 = vld [vmem:[#allocation2 + $0x294] ss:$8 sps:$4 sm:$0xff]  }
 0x12a   :  { %1512 = vmatmul.mubr.msk.bf16.gmra.mrb[24].mxu1 %vm247_vm1, %v1690_v8 }
 0x12b   :  { %366 = vmatprep.mubr.bf16.mxu1 %v1939_v0  ;;  %703 = vmatpush1.bf16.msra.mxu1 %v1770_v21 }
 0x132   :  { %1513 = vmatmul.mubr.msk.bf16.gmra.mrb[28].mxu1 %vm247_vm1, %v1691_v9  ;;  %v1809_v9 = vld [vmem:[#allocation2 + $0x260] ss:$8 sps:$4 sm:$0xff]  }
 0x133   :  { %376 = vmatprep.mubr.bf16.mxu1 %v1939_v0 }
 0x13a   :  { %1514 = vmatmul.mubr.msk.bf16.gmra.mrb[32].mxu1 %vm247_vm1, %v1692_v10  ;;  %v1817_v10 = vld [vmem:[#allocation2 + $0x274] ss:$8 sps:$4 sm:$0xff]  }
 0x13b   :  { %386 = vmatprep.mubr.bf16.mxu1 %v1939_v0 }
 0x142   :  { %1515 = vmatmul.mubr.msk.bf16.gmra.mrb[36].mxu1 %vm247_vm1, %v1693_v11 }
 0x143   :  { %396 = vmatprep.mubr.bf16.mxu1 %v1939_v0 }
 0x14a   :  { %1516 = vmatmul.mubr.msk.bf16.gmra.mrb[40].mxu1 %vm247_vm1, %v1694_v12  ;;  %v1815_v12 = vld [vmem:[#allocation2 + $0x270] ss:$8 sps:$4 sm:$0xff]  }
 0x14b   :  { %406 = vmatprep.mubr.bf16.mxu1 %v1939_v0 }
 0x152   :  { %1517 = vmatmul.mubr.msk.bf16.gmra.mrb[44].mxu1 %vm247_vm1, %v1695_v13 }
 0x153   :  { %416 = vmatprep.mubr.bf16.mxu1 %v1939_v0 }
 0x15a   :  { %1518 = vmatmul.mubr.msk.bf16.gmra.mrb[48].mxu1 %vm247_vm1, %v1696_v14  ;;  %v1820_v14 = vld [vmem:[#allocation2 + $0x284] ss:$8 sps:$4 sm:$0xff]  }
 0x15b   :  { %426 = vmatprep.mubr.bf16.mxu1 %v1939_v0  ;;  %v1778_v0 = vld [vmem:[#allocation2 + $0x194] ss:$8 sps:$4 sm:$0xff]  }
 0x15c   :  { %704 = vmatprep.subr.bf16.mxu1 %v1778_v0 }
 0x15d   :  { %705 = vmatpush1.bf16.msra.mxu1 %v1776_v23  ;;  %v1826_v23 = vld [vmem:[#allocation2 + $0x2a4] ss:$8 sps:$4 sm:$0xff]  }
 0x15e   :  { %706 = vmatprep.subr.bf16.mxu1 %v1784_v25 }
 0x161   :  { %707 = vmatpush1.bf16.msra.mxu1 %v1782_v24 }
 0x162   :  { %1519 = vmatmul.mubr.msk.bf16.gmra.mrb[52].mxu1 %vm247_vm1, %v1697_v15  ;;  %708 = vmatprep.subr.bf16.mxu1 %v1790_v26 }
 0x165   :  { %709 = vmatpush1.bf16.msra.mxu1 %v1788_v27 }
 0x166   :  { %710 = vmatprep.subr.bf16.mxu1 %v1796_v29  ;;  %v1829_v29 = vld [vmem:[#allocation2 + $0x2b4] ss:$8 sps:$4 sm:$0xff]  }
 0x169   :  { %711 = vmatpush1.bf16.msra.mxu1 %v1794_v28  ;;  %v1824_v28 = vld [vmem:[#allocation2 + $0x2a0] ss:$8 sps:$4 sm:$0xff]  }
 0x16a   :  { %712 = vmatprep.subr.bf16.mxu1 %v1802_v30 }
 0x16d   :  { %713 = vmatpush1.bf16.msra.mxu1 %v1800_v31  ;;  %v1827_v31 = vld [vmem:[#allocation2 + $0x2b0] ss:$8 sps:$4 sm:$0xff]  }
 0x16e   :  { %714 = vmatprep.subr.bf16.mxu1 %v1808_v33  ;;  %v1832_v33 = vld [vmem:[#allocation2 + $0x2c4] ss:$8 sps:$4 sm:$0xff]  }
 0x171   :  { %715 = vmatpush1.bf16.msra.mxu1 %v1806_v32 }
 0x172   :  { %716 = vmatprep.subr.bf16.mxu1 %v1814_v34 }
 0x175   :  { %717 = vmatpush1.bf16.msra.mxu1 %v1812_v35 }
 0x1dd   :  { %v318_v36 = vpop.f32.mrb[8].mxu1 }
 0x1de   :  { %v320_v37 = vpop.f32.mrb[9].mxu1 }
 0x1df   :  { %v322_v38 = vpop.f32.mrb[10].mxu1 }
 0x1e0   :  { %v437_v39 = vpack.c.bf16 %v322_v38, %v318_v36  ;;  %v324_v40 = vpop.f32.mrb[11].mxu1  ;;  %v1830_v38 = vld [vmem:[#allocation2 + $0x2c0] ss:$8 sps:$4 sm:$0xff]  }
 0x1e1   :  { %v438_v41 = vpack.c.bf16 %v324_v40, %v320_v37 }
 0x1e3   :  { %951 = vmatprep.mubr.bf16.mxu0 %v438_v41  ;;  %v1833_v41 = vld [vmem:[#allocation2 + $0x2d0] ss:$8 sps:$4 sm:$0xff]  }
 0x1e4   :  { %952 = vmatmul.mubr.bf16.vlgmr.msra.gmra.mrb[0].mxu0 %v437_v39  ;;  %v1835_v39 = vld [vmem:[#allocation2 + $0x2d4] ss:$8 sps:$4 sm:$0xff]  }
 0x1e5   :  { %1186 = vmatpush1.bf16.msra.mxu0 %v1773_v42  ;;  %v328_v44 = vpop.f32.mrb[12].mxu1 }
 0x1e6   :  { %v330_v46 = vpop.f32.mrb[13].mxu1  ;;  %1187 = vmatprep.subr.bf16.mxu0 %v1781_v43  ;;  %v1838_v43 = vld [vmem:[#allocation2 + $0x2e4] ss:$8 sps:$4 sm:$0xff]  }
 0x1e7   :  { %v332_v48 = vpop.f32.mrb[14].mxu1 }
 0x1e8   :  { %v439_v49 = vpack.c.bf16 %v332_v48, %v328_v44  ;;  %v334_v50 = vpop.f32.mrb[15].mxu1  ;;  %v1836_v48 = vld [vmem:[#allocation2 + $0x2e0] ss:$8 sps:$4 sm:$0xff]  }
 0x1e9   :  { %v440_v51 = vpack.c.bf16 %v334_v50, %v330_v46  ;;  %1188 = vmatpush1.bf16.msra.mxu0 %v1779_v45 }
 0x1ea   :  { %1189 = vmatprep.subr.bf16.mxu0 %v1787_v47 }
 0x1eb   :  { %961 = vmatprep.mubr.bf16.mxu0 %v440_v51  ;;  %v1839_v51 = vld [vmem:[#allocation2 + $0x2f0] ss:$8 sps:$4 sm:$0xff]  }
 0x1ec   :  { %962 = vmatmul.mubr.bf16.gmra.mrb[4].mxu0 %v439_v49  ;;  %v1841_v49 = vld [vmem:[#allocation2 + $0x2f4] ss:$8 sps:$4 sm:$0xff]  }
 0x1ed   :  { %1190 = vmatpush1.bf16.msra.mxu0 %v1785_v52  ;;  %v338_v54 = vpop.f32.mrb[16].mxu1 }
 0x1ee   :  { %v340_v56 = vpop.f32.mrb[17].mxu1  ;;  %1191 = vmatprep.subr.bf16.mxu0 %v1793_v53 }
 0x1ef   :  { %v342_v58 = vpop.f32.mrb[18].mxu1 }
 0x1f0   :  { %v441_v59 = vpack.c.bf16 %v342_v58, %v338_v54  ;;  %v344_v60 = vpop.f32.mrb[19].mxu1 }
 0x1f1   :  { %v442_v61 = vpack.c.bf16 %v344_v60, %v340_v56  ;;  %1192 = vmatpush1.bf16.msra.mxu0 %v1791_v55 }
 0x1f2   :  { %1193 = vmatprep.subr.bf16.mxu0 %v1799_v57 }
 0x1f3   :  { %971 = vmatprep.mubr.bf16.mxu0 %v442_v61 }
 0x1f4   :  { %972 = vmatmul.mubr.bf16.gmra.mrb[8].mxu0 %v441_v59 }
 0x1f5   :  { %1194 = vmatpush1.bf16.msra.mxu0 %v1797_v62  ;;  %v348_v1 = vpop.f32.mrb[20].mxu1 }
 0x1f6   :  { %v350_v3 = vpop.f32.mrb[21].mxu1  ;;  %1195 = vmatprep.subr.bf16.mxu0 %v1805_v63 }
 0x1f7   :  { %v352_v5 = vpop.f32.mrb[22].mxu1 }
 0x1f8   :  { %v443_v6 = vpack.c.bf16 %v352_v5, %v348_v1  ;;  %v354_v7 = vpop.f32.mrb[23].mxu1 }
 0x1f9   :  { %v444_v8 = vpack.c.bf16 %v354_v7, %v350_v3  ;;  %1196 = vmatpush1.bf16.msra.mxu0 %v1803_v2 }
 0x1fa   :  { %1197 = vmatprep.subr.bf16.mxu0 %v1811_v4 }
 0x1fb   :  { %981 = vmatprep.mubr.bf16.mxu0 %v444_v8 }
 0x1fc   :  { %982 = vmatmul.mubr.bf16.gmra.mrb[12].mxu0 %v443_v6 }
 0x1fd   :  { %v358_v11 = vpop.f32.mrb[24].mxu1  ;;  %1198 = vmatpush1.bf16.msra.mxu0 %v1809_v9 }
 0x1fe   :  { %v360_v13 = vpop.f32.mrb[25].mxu1  ;;  %1199 = vmatprep.subr.bf16.mxu0 %v1817_v10 }
 0x1ff   :  { %v362_v15 = vpop.f32.mrb[26].mxu1 }
 0x200   :  { %v445_v16 = vpack.c.bf16 %v362_v15, %v358_v11  ;;  %v364_v17 = vpop.f32.mrb[27].mxu1 }
 0x201   :  { %v446_v18 = vpack.c.bf16 %v364_v17, %v360_v13  ;;  %1200 = vmatpush1.bf16.msra.mxu0 %v1815_v12 }
 0x202   :  { %1201 = vmatprep.subr.bf16.mxu0 %v1820_v14 }
 0x203   :  { %718 = vmatprep.mubr.bf16.mxu1 %v446_v18 }
 0x204   :  { %719 = vmatmul.mubr.bf16.vlgmr.msra.gmra.mrb[56].mxu1 %v445_v16 }
 0x205   :  { %v368_v21 = vpop.f32.mrb[28].mxu1  ;;  %1202 = vmatpush1.bf16.msra.mxu0 %v1818_v19 }
 0x206   :  { %v370_v0 = vpop.f32.mrb[29].mxu1  ;;  %1203 = vmatprep.subr.bf16.mxu0 %v1823_v20 }
 0x207   :  { %v372_v24 = vpop.f32.mrb[30].mxu1 }
 0x208   :  { %v447_v25 = vpack.c.bf16 %v372_v24, %v368_v21  ;;  %v374_v26 = vpop.f32.mrb[31].mxu1 }
 0x209   :  { %v448_v27 = vpack.c.bf16 %v374_v26, %v370_v0  ;;  %1204 = vmatpush1.bf16.msra.mxu0 %v1821_v22 }
 0x20a   :  { %1205 = vmatprep.subr.bf16.mxu0 %v1826_v23 }
 0x20b   :  { %728 = vmatprep.mubr.bf16.mxu1 %v448_v27 }
 0x20c   :  { %729 = vmatmul.mubr.bf16.gmra.mrb[60].mxu1 %v447_v25 }
 0x20d   :  { %v378_v30 = vpop.f32.mrb[32].mxu1  ;;  %1206 = vmatpush1.bf16.msra.mxu0 %v1824_v28 }
 0x20e   :  { %v380_v32 = vpop.f32.mrb[33].mxu1  ;;  %1207 = vmatprep.subr.bf16.mxu0 %v1829_v29 }
 0x20f   :  { %v382_v34 = vpop.f32.mrb[34].mxu1 }
 0x210   :  { %v449_v35 = vpack.c.bf16 %v382_v34, %v378_v30  ;;  %v384_v36 = vpop.f32.mrb[35].mxu1 }
 0x211   :  { %v450_v37 = vpack.c.bf16 %v384_v36, %v380_v32  ;;  %1208 = vmatpush1.bf16.msra.mxu0 %v1827_v31 }
 0x212   :  { %1209 = vmatprep.subr.bf16.mxu0 %v1832_v33 }
 0x213   :  { %738 = vmatprep.mubr.bf16.mxu1 %v450_v37 }
 0x214   :  { %739 = vmatmul.mubr.bf16.gmra.mrb[64].mxu1 %v449_v35 }
 0x215   :  { %v388_v40 = vpop.f32.mrb[36].mxu1  ;;  %1210 = vmatpush1.bf16.msra.mxu0 %v1830_v38 }
 0x216   :  { %v390_v42 = vpop.f32.mrb[37].mxu1  ;;  %1211 = vmatprep.subr.bf16.mxu0 %v1835_v39 }
 0x217   :  { %v392_v44 = vpop.f32.mrb[38].mxu1 }
 0x218   :  { %v451_v45 = vpack.c.bf16 %v392_v44, %v388_v40  ;;  %v394_v46 = vpop.f32.mrb[39].mxu1 }
 0x219   :  { %v452_v47 = vpack.c.bf16 %v394_v46, %v390_v42  ;;  %1212 = vmatpush1.bf16.msra.mxu0 %v1833_v41 }
 0x21a   :  { %1213 = vmatprep.subr.bf16.mxu0 %v1838_v43 }
 0x21b   :  { %748 = vmatprep.mubr.bf16.mxu1 %v452_v47 }
 0x21c   :  { %749 = vmatmul.mubr.bf16.gmra.mrb[68].mxu1 %v451_v45 }
 0x21d   :  { %v398_v50 = vpop.f32.mrb[40].mxu1  ;;  %1214 = vmatpush1.bf16.msra.mxu0 %v1836_v48 }
 0x21e   :  { %v400_v52 = vpop.f32.mrb[41].mxu1  ;;  %1215 = vmatprep.subr.bf16.mxu0 %v1841_v49 }
 0x21f   :  { %v402_v53 = vpop.f32.mrb[42].mxu1 }
 0x220   :  { %v453_v54 = vpack.c.bf16 %v402_v53, %v398_v50  ;;  %v404_v55 = vpop.f32.mrb[43].mxu1 }
 0x221   :  { %v454_v56 = vpack.c.bf16 %v404_v55, %v400_v52  ;;  %1216 = vmatpush1.bf16.msra.mxu0 %v1839_v51 }
 0x223   :  { %1217 = vmatprep.mubr.bf16.mxu0 %v454_v56 }
 0x224   :  { %1218 = vmatmul.mubr.bf16.vlgmr.msra.gmra.mrb[0].mxu0 %v453_v54 }
 0x225   :  { %v408_v57 = vpop.f32.mrb[44].mxu1 }
 0x226   :  { %v410_v58 = vpop.f32.mrb[45].mxu1 }
 0x227   :  { %v412_v59 = vpop.f32.mrb[46].mxu1 }
 0x228   :  { %v455_v60 = vpack.c.bf16 %v412_v59, %v408_v57  ;;  %v414_v61 = vpop.f32.mrb[47].mxu1 }
 0x229   :  { %v456_v62 = vpack.c.bf16 %v414_v61, %v410_v58 }
 0x22b   :  { %1227 = vmatprep.mubr.bf16.mxu0 %v456_v62 }
 0x22c   :  { %1228 = vmatmul.mubr.bf16.gmra.mrb[4].mxu0 %v455_v60 }
 0x22d   :  { %v418_v63 = vpop.f32.mrb[48].mxu1 }
 0x22e   :  { %v420_v1 = vpop.f32.mrb[49].mxu1 }
 0x22f   :  { %v422_v2 = vpop.f32.mrb[50].mxu1 }
 0x230   :  { %v457_v3 = vpack.c.bf16 %v422_v2, %v418_v63  ;;  %v424_v4 = vpop.f32.mrb[51].mxu1 }
 0x231   :  { %v458_v5 = vpack.c.bf16 %v424_v4, %v420_v1 }
 0x233   :  { %1237 = vmatprep.mubr.bf16.mxu0 %v458_v5 }
 0x234   :  { %1238 = vmatmul.mubr.bf16.gmra.mrb[8].mxu0 %v457_v3 }
 0x235   :  { %v428_v6 = vpop.f32.mrb[52].mxu1 }
 0x236   :  { %v430_v7 = vpop.f32.mrb[53].mxu1 }
 0x237   :  { %v432_v8 = vpop.f32.mrb[54].mxu1 }
 0x238   :  { %v459_v9 = vpack.c.bf16 %v432_v8, %v428_v6  ;;  %v434_v10 = vpop.f32.mrb[55].mxu1 }
 0x239   :  { %v460_v11 = vpack.c.bf16 %v434_v10, %v430_v7 }
 0x23b   :  { %1247 = vmatprep.mubr.bf16.mxu0 %v460_v11 }
 0x23c   :  { %1248 = vmatmul.mubr.bf16.gmra.mrb[12].mxu0 %v459_v9 }
 0x2d7   :  { %v720_v12 = vpop.f32.mrb[56].mxu1 }
 0x2d8   :  { %v722_v13 = vpop.f32.mrb[57].mxu1 }
 0x2d9   :  { %v724_v14 = vpop.f32.mrb[58].mxu1 }
 0x2da   :  { %v726_v15 = vpop.f32.mrb[59].mxu1 }
 0x2df   :  { %v730_v16 = vpop.f32.mrb[60].mxu1 }
 0x2e0   :  { %v732_v17 = vpop.f32.mrb[61].mxu1 }
 0x2e1   :  { %v734_v18 = vpop.f32.mrb[62].mxu1 }
 0x2e2   :  { %v736_v19 = vpop.f32.mrb[63].mxu1 }
 0x2e7   :  { %v740_v20 = vpop.f32.mrb[64].mxu1 }
 0x2e8   :  { %v742_v21 = vpop.f32.mrb[65].mxu1 }
 0x2e9   :  { %v744_v22 = vpop.f32.mrb[66].mxu1 }
 0x2ea   :  { %v746_v0 = vpop.f32.mrb[67].mxu1 }
 0x2ef   :  { %v2086_v23 = vpop.f32.mrb[68].mxu1 }
 0x2f0   :  { %v2088_v24 = vpop.f32.mrb[69].mxu1 }
 0x2f1   :  { %v2090_v25 = vpop.f32.mrb[70].mxu1 }
 0x2f2   :  { %v2092_v26 = vpop.f32.mrb[71].mxu1 }
 0x2f7   :  { %v1219_v27 = vpop.f32.mrb[0].mxu0 }
 0x2f8   :  { %v1632_v28 = vadd.f32 %v1219_v27, %v720_v12  ;;  %v1221_v29 = vpop.f32.mrb[1].mxu0 }
 0x2f9   :  { %v1633_v30 = vadd.f32 %v1221_v29, %v722_v13  ;;  %v1223_v31 = vpop.f32.mrb[2].mxu0 }
 0x2fa   :  { %v1634_v32 = vadd.f32 %v1223_v31, %v724_v14  ;;  %v1225_v33 = vpop.f32.mrb[3].mxu0  ;;  %v1379_v36 = vmul.f32 %v1632_v28, %v1632_v28 }
 0x2fb   :  { %v1624_v34 = vpack.c.bf16 %v1633_v30, %v1632_v28  ;;  %v1635_v35 = vadd.f32 %v1225_v33, %v726_v15  ;;  %v1380_v39 = vmul.f32 %v1633_v30, %v1633_v30 }
 0x2fc   :  { %v1330_v37 = vadd.f32 %v1634_v32, %v1632_v28  ;;  %v1381_v38 = vmul.f32 %v1634_v32, %v1634_v32 }
 0x2fd   :  { %1322 = vst [vmem:[#allocation5] sm:$0xff] %v1624_v34  ;;  %v1625_v40 = vpack.c.bf16 %v1635_v35, %v1634_v32  ;;  %v1343_v41 = vadd.f32 %v1635_v35, %v1633_v30  ;;  %v1382_v42 = vmul.f32 %v1635_v35, %v1635_v35 }
 0x2fe   :  { %v1395_v43 = vadd.f32 %v1381_v38, %v1379_v36 }
 0x2ff   :  { %1323 = vst [vmem:[#allocation5 + $0x8] sm:$0xff] %v1625_v40  ;;  %v1408_v44 = vadd.f32 %v1382_v42, %v1380_v39  ;;  %v1229_v45 = vpop.f32.mrb[4].mxu0 }
 0x300   :  { %v1636_v46 = vadd.f32 %v1229_v45, %v730_v16  ;;  %v1231_v47 = vpop.f32.mrb[5].mxu0 }
 0x301   :  { %v1637_v48 = vadd.f32 %v1231_v47, %v732_v17  ;;  %v1233_v49 = vpop.f32.mrb[6].mxu0 }
 0x302   :  { %v1331_v50 = vadd.f32 %v1636_v46, %v1330_v37  ;;  %v1383_v51 = vmul.f32 %v1636_v46, %v1636_v46  ;;  %v1638_v52 = vadd.f32 %v1233_v49, %v734_v18  ;;  %v1235_v53 = vpop.f32.mrb[7].mxu0 }
 0x303   :  { %v1626_v54 = vpack.c.bf16 %v1637_v48, %v1636_v46  ;;  %v1344_v55 = vadd.f32 %v1637_v48, %v1343_v41  ;;  %v1384_v56 = vmul.f32 %v1637_v48, %v1637_v48  ;;  %v1639_v57 = vadd.f32 %v1235_v53, %v736_v19 }
 0x304   :  { %v1396_v58 = vadd.f32 %v1395_v43, %v1383_v51  ;;  %v1332_v59 = vadd.f32 %v1638_v52, %v1331_v50  ;;  %v1385_v60 = vmul.f32 %v1638_v52, %v1638_v52 }
 0x305   :  { %1324 = vst [vmem:[#allocation5 + $0x10] sm:$0xff] %v1626_v54  ;;  %v1409_v61 = vadd.f32 %v1408_v44, %v1384_v56  ;;  %v1627_v62 = vpack.c.bf16 %v1639_v57, %v1638_v52  ;;  %v1345_v63 = vadd.f32 %v1639_v57, %v1344_v55  ;;  %v1386_v1 = vmul.f32 %v1639_v57, %v1639_v57 }
 0x306   :  { %v1397_v2 = vadd.f32 %v1396_v58, %v1385_v60 }
 0x307   :  { %1325 = vst [vmem:[#allocation5 + $0x18] sm:$0xff] %v1627_v62  ;;  %v1410_v3 = vadd.f32 %v1409_v61, %v1386_v1  ;;  %v1239_v4 = vpop.f32.mrb[8].mxu0 }
 0x308   :  { %v1640_v5 = vadd.f32 %v1239_v4, %v740_v20  ;;  %v1241_v6 = vpop.f32.mrb[9].mxu0 }
 0x309   :  { %v1641_v7 = vadd.f32 %v1241_v6, %v742_v21  ;;  %v1243_v8 = vpop.f32.mrb[10].mxu0 }
 0x30a   :  { %v1333_v9 = vadd.f32 %v1640_v5, %v1332_v59  ;;  %v1387_v10 = vmul.f32 %v1640_v5, %v1640_v5  ;;  %v1642_v11 = vadd.f32 %v1243_v8, %v744_v22  ;;  %v1245_v12 = vpop.f32.mrb[11].mxu0 }
 0x30b   :  { %v1628_v13 = vpack.c.bf16 %v1641_v7, %v1640_v5  ;;  %v1346_v14 = vadd.f32 %v1641_v7, %v1345_v63  ;;  %v1388_v15 = vmul.f32 %v1641_v7, %v1641_v7  ;;  %v1643_v16 = vadd.f32 %v1245_v12, %v746_v0 }
 0x30c   :  { %v1398_v17 = vadd.f32 %v1397_v2, %v1387_v10  ;;  %v1334_v18 = vadd.f32 %v1642_v11, %v1333_v9  ;;  %v1389_v19 = vmul.f32 %v1642_v11, %v1642_v11 }
 0x30d   :  { %1326 = vst [vmem:[#allocation5 + $0x20] sm:$0xff] %v1628_v13  ;;  %v1411_v27 = vadd.f32 %v1410_v3, %v1388_v15  ;;  %v1629_v28 = vpack.c.bf16 %v1643_v16, %v1642_v11  ;;  %v1347_v29 = vadd.f32 %v1643_v16, %v1346_v14  ;;  %v1390_v30 = vmul.f32 %v1643_v16, %v1643_v16 }
 0x30e   :  { %v1399_v20 = vadd.f32 %v1398_v17, %v1389_v19 }
 0x30f   :  { %1327 = vst [vmem:[#allocation5 + $0x28] sm:$0xff] %v1629_v28  ;;  %v1412_v21 = vadd.f32 %v1411_v27, %v1390_v30  ;;  %v1249_v31 = vpop.f32.mrb[12].mxu0 }
 0x310   :  { %v1644_v32 = vadd.f32 %v1249_v31, %v2086_v23  ;;  %v1251_v22 = vpop.f32.mrb[13].mxu0 }
 0x311   :  { %v1645_v33 = vadd.f32 %v1251_v22, %v2088_v24  ;;  %v1253_v34 = vpop.f32.mrb[14].mxu0 }
 0x312   :  { %v1335_v35 = vadd.f32 %v1644_v32, %v1334_v18  ;;  %v1391_v0 = vmul.f32 %v1644_v32, %v1644_v32  ;;  %v1646_v36 = vadd.f32 %v1253_v34, %v2090_v25  ;;  %v1255_v37 = vpop.f32.mrb[15].mxu0 }
 0x313   :  { %v1630_v38 = vpack.c.bf16 %v1645_v33, %v1644_v32  ;;  %v1348_v39 = vadd.f32 %v1645_v33, %v1347_v29  ;;  %v1392_v40 = vmul.f32 %v1645_v33, %v1645_v33  ;;  %v1647_v41 = vadd.f32 %v1255_v37, %v2092_v26 }
 0x314   :  { %v1400_v42 = vadd.f32 %v1399_v20, %v1391_v0  ;;  %v1336_v43 = vadd.f32 %v1646_v36, %v1335_v35  ;;  %v1393_v44 = vmul.f32 %v1646_v36, %v1646_v36 }
 0x315   :  { %1328 = vst [vmem:[#allocation5 + $0x30] sm:$0xff] %v1630_v38  ;;  %v1413_v23 = vadd.f32 %v1412_v21, %v1392_v40  ;;  %v1631_v45 = vpack.c.bf16 %v1647_v41, %v1646_v36  ;;  %v1349_v24 = vadd.f32 %v1647_v41, %v1348_v39  ;;  %v1394_v46 = vmul.f32 %v1647_v41, %v1647_v41 }
 0x316   :  { %v1337_v47 = vrot.slane %v1336_v43, 4  ;;  %v1401_v48 = vadd.f32 %v1400_v42, %v1393_v44 }
 0x317   :  { %1329 = vst [vmem:[#allocation5 + $0x38] sm:$0xff] %v1631_v45  ;;  %v1350_v25 = vrot.slane %v1349_v24, 4  ;;  %v1414_v49 = vadd.f32 %v1413_v23, %v1394_v46 }
 0x318   :  { %v1338_v50 = vadd.f32 %v1337_v47, %v1336_v43  ;;  %v1402_v51 = vrot.slane %v1401_v48, 4 }
 0x319   :  { %1875 = shalt.err (!%p1872_p12)
}
 0x31a   :  { %s1876_s9 = scalar_lea.hbm %s2149_s4, 1024 }
 0x31b   :  { %p1877_p13 = scmp.ne.s32.totalorder %s2149_s4, %s1876_s9  ;;  %p1880_p0 = scmp.lt.u32.totalorder %s1876_s9, %s2149_s4 }
 0x31d   :  { %p1882_p1 = pnand %p1880_p0, %p1877_p13 }
 0x31f   :  { %1885 = shalt.err (!%p1882_p1)
}
 0x320   :  { %1451 = dma.vmem_to_hbm [thread:$0]  %s1446_s29, 1024, %s2149_s4, [#allocation4], %s1937_s7, %s1937_s7, %s1938_s8   ;;  %v1351_v26 = vadd.f32 %v1350_v25, %v1349_v24  ;;  %v1415_v52 = vrot.slane %v1414_v49, 4  ;;  %v1941_v53 = vmov 1966171168   ;;  %v1362_v55 = vlaneseq }
 0x321   :  { %v1360_v54 = vunpack.c.l.s4 %v1941_v53  ;;  %v1339_v56 = vrot.slane %v1338_v50, 2  ;;  %v1403_v57 = vadd.f32 %v1402_v51, %v1401_v48  ;;  %s1942_s4 = smov [#allocation6]   ;;  %s1943_s8 = smov [#allocation8]  }
 0x322   :  { %v1352_v58 = vrot.slane %v1351_v26, 2  ;;  %v1416_v59 = vadd.f32 %v1415_v52, %v1414_v49  ;;  %v1363_v2 = vshrl.u32 %v1362_v55, 7  ;;  %s1458_s7 = sshll.u32 %s1942_s4, 4  ;;  %vm2113_vm2 = vcmp.lt.s32.totalorder %v1362_v55, 256  ;;  %s1468_s16 = sshll.u32 %s1943_s8, 4  ;;  %s1459_s7 = int_to_ptr.vmem [resolvable:$true] %s1458_s7  ;;  %s1469_s16 = int_to_ptr.vmem [resolvable:$true] %s1468_s16 }
 0x323   :  { %v1340_v60 = vadd.f32 %v1339_v56, %v1338_v50  ;;  %v1404_v61 = vrot.slane %v1403_v57, 2  ;;  %v1361_v1 = vunpack.c.0.s8 %v1360_v54  ;;  %s1886_s3 = scalar_lea.vmem %s1459_s7, 32  ;;  %p1891_p3 = scmp.lt.s32.totalorder %s1459_s7, %s1459_s7 }
 0x324   :  { %v1353_v62 = vadd.f32 %v1352_v58, %v1351_v26  ;;  %v1417_v63 = vrot.slane %v1416_v59, 2  ;;  %p1887_p2 = scmp.ne.s32.totalorder %s1459_s7, %s1886_s3  ;;  %p1892_p4 = scmp.lt.s32.totalorder %s1886_s3, %s1886_s3 }
 0x325   :  { %v1341_v3 = vrot.slane %v1340_v60, 1  ;;  %v1405_v4 = vadd.f32 %v1404_v61, %v1403_v57  ;;  %v1364_v11 = vsub.s32 %v1361_v1, %v1363_v2 }
 0x326   :  { %v1354_v5 = vrot.slane %v1353_v62, 1  ;;  %v1418_v6 = vadd.f32 %v1417_v63, %v1416_v59  ;;  %p1893_p5 = por %p1892_p4, %p1891_p3 }
 0x327   :  { %v1342_v7 = vadd.f32 %v1341_v3, %v1340_v60  ;;  %v1406_v8 = vrot.slane %v1405_v4, 1 }
 0x328   :  { %v1355_v9 = vadd.f32 %v1354_v5, %v1353_v62  ;;  %v1419_v10 = vrot.slane %v1418_v6, 1  ;;  %p1894_p6 = pnand %p1893_p5, %p1887_p2 }
 0x329   :  { %v1407_v12 = vadd.f32 %v1406_v8, %v1405_v4 }
 0x32a   :  { %v1420_v13 = vadd.f32 %v1419_v10, %v1418_v6  ;;  %v1358_v14 = vcombine.low %v1342_v7, %v1355_v9 }
 0x32c   :  { %v1365_v15 = vrot.slane %v1358_v14, %v1364_v11  ;;  %v1423_v16 = vcombine.low %v1407_v12, %v1420_v13 }
 0x32e   :  { %v1372_v18 = vrot.slane %v1365_v15, %v1364_v11  ;;  %v1430_v19 = vrot.slane %v1423_v16, %v1364_v11 }
 0x330   :  { %1378 = vst.msk [vmem:[#allocation6] sm:$0x3] %vm2113_vm2, %v1372_v18  ;;  %v1437_v27 = vrot.slane %v1430_v19, %v1364_v11 }
 0x331   :  { %1897 = shalt.err (!%p1894_p6)
}
 0x332   :  { %s1898_s19 = scalar_lea.hbm %s2150_s5, 32 }
 0x333   :  { %p1899_p7 = scmp.ne.s32.totalorder %s2150_s5, %s1898_s19  ;;  %p1902_p8 = scmp.lt.u32.totalorder %s1898_s19, %s2150_s5 }
 0x335   :  { %p1904_p9 = pnand %p1902_p8, %p1899_p7 }
 0x337   :  { %1907 = shalt.err (!%p1904_p9)
}
 0x338   :  { %1461 = dma.vmem_to_hbm [thread:$0]  %s1459_s7, 32, %s2150_s5, [#allocation7]   ;;  %1439 = vst.msk [vmem:[#allocation8] sm:$0x3] %vm2113_vm2, %v1437_v27 }
 0x339   :  { %s1908_s26 = scalar_lea.vmem %s1469_s16, 32  ;;  %p1913_p11 = scmp.lt.s32.totalorder %s1469_s16, %s1469_s16 }
 0x33a   :  { %p1909_p10 = scmp.ne.s32.totalorder %s1469_s16, %s1908_s26  ;;  %p1914_p12 = scmp.lt.s32.totalorder %s1908_s26, %s1908_s26 }
 0x33c   :  { %p1915_p13 = por %p1914_p12, %p1913_p11 }
 0x33e   :  { %p1916_p0 = pnand %p1915_p13, %p1909_p10 }
 0x340   :  { %1919 = shalt.err (!%p1916_p0)
}
 0x341   :  { %s1920_s2 = scalar_lea.hbm %s2151_s6, 32 }
 0x342   :  { %p1921_p1 = scmp.ne.s32.totalorder %s2151_s6, %s1920_s2  ;;  %p1924_p2 = scmp.lt.u32.totalorder %s1920_s2, %s2151_s6 }
 0x344   :  { %p1926_p3 = pnand %p1924_p2, %p1921_p1 }
 0x346   :  { %1929 = shalt.err (!%p1926_p3)
}
 0x347   :  { %1471 = dma.vmem_to_hbm [thread:$0]  %s1469_s16, 32, %s2151_s6, [#allocation7]  }
 0x348   :  { %1932 = dma.done.wait [#allocation4], 1024  }
 0x349   :  { %1933 = vsyncadd [#allocation4], 4294966272 }
 0x34a   :  { %1934 = dma.done.wait [#allocation7], 64  }
 0x34b   :  { %1935 = vsyncadd [#allocation7], 4294967232 }
 0x34c   :  { %1481 = vsyncpa [#allocation3], 1 }
 0x34d   :  { %1482 = vsyncpa [#allocation4], 1 }
 0x34e   :  { %1483 = vsyncpa [#allocation7], 1 }

</bundles_post_ra>
